<compile_context>
chip_gen: v5e
topology: v5e:2x2
jax: 0.10.0
libtpu: 0.0.40
codegen_flags: <defaults>
</compile_context>

<pallas_src>
import functools
import math

import jax
import jax.numpy as jnp
from jax.experimental import pallas as pl
from jax.experimental.pallas import tpu as pltpu


# ----------------------------------------------------------------------------
# Pos-embed (sincos, spatial index repeated over frames) — mirrors
# get_2d_st_sincos_pos_embed from the PyTorch source.
# ----------------------------------------------------------------------------
def get_2d_st_sincos_pos_embed(embed_dim, grid_size):
    assert embed_dim % 2 == 0, "sincos pos-embed requires an even embed_dim"
    grid_T, grid_J = grid_size
    # position[t*J + j] = j  (joint index inside a frame)
    position = jnp.tile(jnp.arange(grid_J, dtype=jnp.float32), grid_T)[:, None]
    div_term = jnp.exp(
        jnp.arange(0, embed_dim, 2, dtype=jnp.float32) * -(math.log(10000.0) / embed_dim)
    )
    pe = jnp.zeros((grid_T * grid_J, embed_dim), dtype=jnp.float32)
    pe = pe.at[:, 0::2].set(jnp.sin(position * div_term))
    pe = pe.at[:, 1::2].set(jnp.cos(position * div_term))
    return pe  # (L, E)


# ----------------------------------------------------------------------------
# Pallas kernel: row-tiled proj matmul + bias + LayerNorm(E) + LeakyReLU + PE
# All arrays are padded to Epad (multiple of 128) lanes; padded weight/bias
# columns are zero so y[:, E:] == 0 and the lane sums equal the true-E sums.
# ----------------------------------------------------------------------------
def adapter_kernel(p_ref, w_ref, b_ref, lnw_ref, lnb_ref, pos_ref, out_ref, *,
                   e_true, eps, slope):
    tm = p_ref.shape[0]
    epad = w_ref.shape[1]

    # patch projection: conv-as-matmul on the MXU, f32 accumulation
    y = jnp.dot(p_ref[...], w_ref[...], preferred_element_type=jnp.float32)
    y = y + b_ref[...]                                    # bias (padded lanes stay 0)

    # LayerNorm over the true embed dim (eps=1e-5, biased variance).
    # Padded lanes of y are exact zeros, so E[y] and E[y^2] over all Epad lanes
    # with a 1/E scale are exact -- no lane mask needed (trims VPU work).
    inv_e = 1.0 / e_true
    mean = jnp.sum(y, axis=-1, keepdims=True) * inv_e
    mean_sq = jnp.sum(y * y, axis=-1, keepdims=True) * inv_e
    var = jnp.maximum(mean_sq - mean * mean, 0.0)
    y = (y - mean) * jax.lax.rsqrt(var + eps)
    y = y * lnw_ref[...] + lnb_ref[...]                   # padded lanes -> 0 (lnw/lnb pad = 0)

    # LeakyReLU(slope); slope in [0, 1] so max(y, slope*y) == leaky_relu(y)
    y = jnp.maximum(y, slope * y)

    # absolute sincos positional embedding
    pos_rows = pos_ref.shape[0]
    if pos_rows == tm:
        y = y + pos_ref[...]
    else:
        # grid-invariant (L, Epad) block, TM % L == 0 and L % 8 == 0, so the
        # reshape is a layout no-op in VMEM.
        y = (y.reshape(tm // pos_rows, pos_rows, epad) + pos_ref[...]).reshape(tm, epad)

    out_ref[...] = y.astype(out_ref.dtype)                # lane-dense full-width store


def _im2col(x, p0, p1, s_t, s_j):
    """x: (B, C, T, V) -> patches (B, Tp*Jp, C*p0*p1), flat order (c, pt, pj)."""
    B, C, T, V = x.shape
    Tp = (T - p0) // s_t + 1
    Jp = (V - p1) // s_j + 1
    if s_t == p0 and s_j == p1 and T == Tp * p0 and V == Jp * p1:
        # Default path (stride == patch, non-overlapping): pure reshape/transpose,
        # no XLA gather HLO, single relayout copy (cheaper still in bf16).
        patches = x.reshape(B, C, Tp, p0, Jp, p1)
    else:
        # General strided fallback (overlapping patches): gather.
        t_idx = jnp.arange(Tp)[:, None] * s_t + jnp.arange(p0)[None, :]   # (Tp, p0)
        j_idx = jnp.arange(Jp)[:, None] * s_j + jnp.arange(p1)[None, :]   # (Jp, p1)
        patches = x[:, :, t_idx[:, :, None, None], j_idx[None, None, :, :]]
    # (B, C, Tp, p0, Jp, p1) -> (B, Tp, Jp, C, p0, p1) -> (B, L, K)
    patches = patches.transpose(0, 2, 4, 1, 3, 5).reshape(B, Tp * Jp, C * p0 * p1)
    return patches, Tp, Jp


def _choose_row_tile(L, B, K, Epad, in_itemsize, out_itemsize, vmem_budget,
                     target_rows=4096, min_steps=1):
    """Pick a row tile TM = m*L.

    Preference order:
      * m divides B  -> TM | R, so no row-padding copy and no post-kernel row slice
      * TM % 8 == 0 unless TM spans all rows (Mosaic (8,128) block constraint)
      * double-buffered in/out tiles + resident weight + pos block <= vmem_budget
      * TM <= target_rows, and >= min_steps grid steps when the problem allows it
    """
    R = B * L

    def vmem_bytes(tm):
        return (2 * tm * K * in_itemsize            # double-buffered patch tiles
                + 2 * tm * Epad * out_itemsize      # double-buffered output tiles
                + K * Epad * in_itemsize            # resident projection weight
                + L * Epad * 4                      # grid-invariant pos-embed block
                + 3 * Epad * 4)                     # bias / LN params

    sub_mult = 8 // math.gcd(L, 8)                  # smallest m with (m*L) % 8 == 0

    cap_rows = min(target_rows, R)
    if min_steps > 1 and R >= min_steps * sub_mult * L:
        cap_rows = min(cap_rows, R // min_steps)

    # 1) largest divisor m of B with m*L <= cap_rows, sublane-legal, VMEM-fitting
    for m in range(max(1, min(B, cap_rows // L)), 0, -1):
        tm = m * L
        if B % m:
            continue
        if tm != R and m % sub_mult:
            continue
        if vmem_bytes(tm) <= vmem_budget:
            return tm
    # 2) single whole-array tile if (and only if) it fits the budget
    if vmem_bytes(R) <= vmem_budget:
        return R
    # 3) rare fallback: smallest sublane-legal tile; caller pads rows to a multiple
    #    of TM (only hit when L itself is enormous or B has no usable divisors).
    return sub_mult * L


class SpatialTemporalSeq2DInputAdapterPallas:
    def __init__(self, in_chans, num_joints, num_frames, embed_dim, patch_size,
                 stride_level=(1, 1), LeakyReLUParam=0.1, PE_mean=0.0, PE_std=1.0,
                 key=jax.random.PRNGKey(0)):
        self.in_chans = in_chans
        self.num_joints = num_joints
        self.num_frames = num_frames
        self.embed_dim = embed_dim
        self.patch_size = patch_size
        self.PE_mean = PE_mean
        self.PE_std = PE_std
        self.leaky_slope = float(LeakyReLUParam)

        self.P_T = max(1, patch_size[0] // stride_level[0])
        self.P_J = max(1, patch_size[1] // stride_level[1])
        self.patch_shape = ((num_frames - patch_size[0]) // self.P_T + 1,
                            (num_joints - patch_size[1]) // self.P_J + 1)
        self.num_patches = self.patch_shape[0] * self.patch_shape[1]

        # Parameters (deterministic init; conv weight randomized via PRNGKey so
        # the LayerNorm path is non-degenerate; module __init__ uses ones/zeros).
        k1, _ = jax.random.split(key)
        # conv weight: (E, 3, p0, p1)  (module hard-codes 3 input channels)
        w = jax.random.normal(k1, (embed_dim, 3, patch_size[0], patch_size[1]),
                              dtype=jnp.float32) * 0.02
        self.proj_kernel_weight = w
        self.proj_kernel_bias = jnp.zeros((embed_dim,), jnp.float32)
        self.ln_weight = jnp.ones((embed_dim,), jnp.float32)
        self.ln_bias = jnp.zeros((embed_dim,), jnp.float32)
        self.pos_embed = get_2d_st_sincos_pos_embed(embed_dim, self.patch_shape)  # (L, E)

        # Matmul-form weight: (K, E), K = 3*p0*p1, flatten order (c, pt, pj).
        self.w_mat = w.reshape(embed_dim, -1).T.astype(jnp.float32)

        # Lane-dense padding of the embed dim (zeros, so LN stats stay exact).
        self.E_pad = max(128, ((embed_dim + 127) // 128) * 128)
        pad_e = self.E_pad - embed_dim
        self.w_mat_pad = jnp.pad(self.w_mat, ((0, 0), (0, pad_e)))
        self.bias_pad = jnp.pad(self.proj_kernel_bias, (0, pad_e)).reshape(1, self.E_pad)
        self.lnw_pad = jnp.pad(self.ln_weight, (0, pad_e)).reshape(1, self.E_pad)
        self.lnb_pad = jnp.pad(self.ln_bias, (0, pad_e)).reshape(1, self.E_pad)
        self.pos_embed_pad = jnp.pad(self.pos_embed, ((0, 0), (0, pad_e)))

    def __call__(self, x, *, matmul_dtype=jnp.bfloat16, out_dtype=jnp.float32):
        """x: (N, C, T, V, M) float32 -> dict with tokens (N*M, L, E).

        matmul_dtype: bf16 by default (MXU-native on all TPU generations, halves
        the streamed patch bytes; f32 accumulation, f32 LN/activation). Pass
        jnp.float32 for an exact-f32 path. out_dtype=jnp.bfloat16 also halves the
        writeback if downstream accepts bf16 tokens."""
        assert x.ndim == 5
        # _normalization — faithful to upstream: the guard uses `and`, so it is a
        # no-op unless BOTH mean and std are non-default (do not "fix" silently).
        if self.PE_mean != 0 and self.PE_std != 1:
            x = (x - self.PE_mean) / self.PE_std
        # TODO(synk): input_PE_LN / joint_with_text_embedding / is_2d_dataset /
        #             test_pos_mode='learnable_interpolate' branches not implemented
        #             (disabled in the default config; text branch needs a .pth file).

        N, C, T, V, M = x.shape
        assert C == 3, "projection weight hard-codes 3 input channels (as upstream)"
        in_dtype = jnp.dtype(matmul_dtype)
        itemsize = in_dtype.itemsize
        out_itemsize = jnp.dtype(out_dtype).itemsize

        # (N,C,T,V,M) -> (B, C, T, V); cast to the matmul dtype BEFORE the im2col
        # relayout so the XLA transpose moves half the bytes on the bf16 path.
        xb = jnp.transpose(x, (0, 4, 1, 2, 3)).reshape(N * M, C, T, V).astype(in_dtype)
        patches, Tp, Jp = _im2col(xb, self.patch_size[0], self.patch_size[1],
                                  self.P_T, self.P_J)
        B, L, K = patches.shape
        E, Epad = self.embed_dim, self.E_pad
        R = B * L
        p_rows = patches.reshape(R, K)                                  # (R, K)
        w_mat = self.w_mat_pad.astype(in_dtype)                         # (K, Epad)

        # ---- generation-aware tile sizing -----------------------------------
        try:
            vmem_cap = int(pltpu.get_tpu_info().vmem_capacity_bytes)
        except Exception:
            vmem_cap = 64 << 20                       # conservative (v7x per-TC VMEM)
        if vmem_cap >= (96 << 20):
            budget, min_steps = 24 << 20, 1           # v5e / v6e: big tiles, 1 TC
        else:
            budget, min_steps = 16 << 20, 8           # v7x: 64 MiB VMEM, 2 TCs
        TM = _choose_row_tile(L, B, K, Epad, itemsize, out_itemsize,
                              vmem_budget=budget, target_rows=4096,
                              min_steps=min_steps)
        if R % TM:                                    # rare fallback path only
            R_pad = pl.cdiv(R, TM) * TM
            p_rows = jnp.pad(p_rows, ((0, R_pad - R), (0, 0)))
        else:
            R_pad = R

        # pos-embed operand: grid-invariant (L, Epad) block added in-kernel via a
        # layout-no-op reshape when L % 8 == 0; otherwise a (TM, Epad) tile.
        if L % 8 == 0:
            pos_arg, pos_rows = self.pos_embed_pad, L
        else:
            pos_arg, pos_rows = jnp.tile(self.pos_embed_pad, (TM // L, 1)), TM

        est_vmem = (2 * TM * K * itemsize + 2 * TM * Epad * out_itemsize
                    + K * Epad * itemsize + pos_rows * Epad * 4 + 3 * Epad * 4)
        vmem_limit = int(min(max(2 * est_vmem, 32 << 20), (vmem_cap * 9) // 10))

        kernel = functools.partial(adapter_kernel, e_true=E, eps=1e-5,
                                   slope=self.leaky_slope)
        out = pl.pallas_call(
            kernel,
            out_shape=jax.ShapeDtypeStruct((R_pad, Epad), out_dtype),
            grid=(R_pad // TM,),
            in_specs=[
                pl.BlockSpec((TM, K), lambda i: (i, 0),
                             pipeline_mode=pl.Buffered(2)),       # streamed patch rows
                pl.BlockSpec((K, Epad), lambda i: (0, 0)),        # resident proj weight
                pl.BlockSpec((1, Epad), lambda i: (0, 0)),        # proj bias
                pl.BlockSpec((1, Epad), lambda i: (0, 0)),        # LN weight
                pl.BlockSpec((1, Epad), lambda i: (0, 0)),        # LN bias
                pl.BlockSpec((pos_rows, Epad), lambda i: (0, 0)), # pos embed (invariant)
            ],
            out_specs=pl.BlockSpec((TM, Epad), lambda i: (i, 0),
                                   pipeline_mode=pl.Buffered(2)),
            compiler_params=pltpu.CompilerParams(
                dimension_semantics=("parallel",),    # shards row grid across TCs (v7x)
                vmem_limit_bytes=vmem_limit),
            cost_estimate=pl.CostEstimate(
                flops=2 * R_pad * K * Epad,
                transcendentals=R_pad,
                bytes_accessed=(R_pad * K * itemsize              # patch rows in
                                + K * Epad * itemsize             # projection weight
                                + R_pad * Epad * out_itemsize     # tokens out
                                + (pos_rows + 3) * Epad * 4)),    # pos + params
        )(p_rows, w_mat, self.bias_pad, self.lnw_pad, self.lnb_pad, pos_arg)

        if R_pad == R and Epad == E:
            tokens = out.reshape(B, L, E)             # pure view, no extra HBM pass
        else:
            tokens = out[:R, :E].reshape(B, L, E)     # drop lane/row padding
        # TODO(synk): if downstream can consume the padded (R, Epad) slab (or bf16
        #             tokens via out_dtype), this slice copy and half the writeback
        #             bandwidth disappear — matters most on v5e.

        return {
            "adapter_output_sparse_labeling": {
                "tokens": tokens, "Bs": B, "N_H": Tp, "N_W": Jp, "attn_mask": None,
            },
            "batch_size": N,
            "nested_mask": None,
        }

    # pure-JAX reference for verification
    def reference(self, x):
        if self.PE_mean != 0 and self.PE_std != 1:
            x = (x - self.PE_mean) / self.PE_std
        N, C, T, V, M = x.shape
        xb = jnp.transpose(x, (0, 4, 1, 2, 3)).reshape(N * M, C, T, V)
        patches, Tp, Jp = _im2col(xb, self.patch_size[0], self.patch_size[1],
                                  self.P_T, self.P_J)
        y = patches.astype(jnp.float32) @ self.w_mat + self.proj_kernel_bias[None, None, :]
        mean = jnp.mean(y, axis=-1, keepdims=True)
        var = jnp.mean(jnp.square(y - mean), axis=-1, keepdims=True)
        y = (y - mean) / jnp.sqrt(var + 1e-5)
        y = y * self.ln_weight + self.ln_bias
        y = jnp.where(y >= 0, y, self.leaky_slope * y)
        y = y + self.pos_embed[None]
        return y


if __name__ == "__main__":
    # Small shapes consistent with the module: keypoint sequences
    N, C, T, V, M = 2, 3, 16, 16, 1          # batch, coord-channels, frames, joints, persons
    embed_dim = 32
    patch_size = (4, 4)

    adapter = SpatialTemporalSeq2DInputAdapterPallas(
        in_chans=C, num_joints=V, num_frames=T, embed_dim=embed_dim,
        patch_size=patch_size, stride_level=(1, 1), key=jax.random.PRNGKey(0))

    x = jax.random.normal(jax.random.PRNGKey(0), (N, C, T, V, M), dtype=jnp.float32)

    ref = adapter.reference(x)

    # f32 matmul path (exact-ish vs reference)
    out_f32 = adapter(x, matmul_dtype=jnp.float32)
    tok_f32 = jax.block_until_ready(out_f32["adapter_output_sparse_labeling"]["tokens"])
    assert tok_f32.shape == (N * M, adapter.num_patches, embed_dim), tok_f32.shape
    assert jnp.allclose(tok_f32, ref, atol=1e-4, rtol=1e-4), \
        float(jnp.max(jnp.abs(tok_f32 - ref)))

    # default bf16-MXU path (f32 accumulation) — looser tolerance
    out_bf16 = adapter(x)
    tok_bf16 = jax.block_until_ready(out_bf16["adapter_output_sparse_labeling"]["tokens"])
    assert tok_bf16.shape == tok_f32.shape
    assert jnp.allclose(tok_bf16, ref, atol=5e-2, rtol=5e-2), \
        float(jnp.max(jnp.abs(tok_bf16 - ref)))

    print("KERNEL_OK")
</pallas_src>

<mosaic_0001>
module attributes {stable_mosaic.version = 11 : i64} {
  func.func @adapter_kernel(%arg0: i32, %arg1: memref<32x48xf32, #tpu.memory_space<vmem>>, %arg2: memref<48x128xf32, #tpu.memory_space<vmem>>, %arg3: memref<1x128xf32, #tpu.memory_space<vmem>>, %arg4: memref<1x128xf32, #tpu.memory_space<vmem>>, %arg5: memref<1x128xf32, #tpu.memory_space<vmem>>, %arg6: memref<16x128xf32, #tpu.memory_space<vmem>>, %arg7: memref<32x128xf32, #tpu.memory_space<vmem>>) attributes {dimension_semantics = [#tpu.dimension_semantics<parallel>], iteration_bounds = array<i64: 1>, scalar_prefetch = 0 : i64, scratch_operands = 0 : i64, tpu.core_type = #tpu.core_type<tc>, window_params = [{pipeline_mode = #tpu.pipeline_mode<double_buffered>, transform_indices = @transform_0, window_bounds = array<i64: 32, 48>}, {pipeline_mode = #tpu.pipeline_mode<synchronous>, transform_indices = @transform_1, window_bounds = array<i64: 48, 128>}, {pipeline_mode = #tpu.pipeline_mode<synchronous>, transform_indices = @transform_2, window_bounds = array<i64: 1, 128>}, {pipeline_mode = #tpu.pipeline_mode<synchronous>, transform_indices = @transform_3, window_bounds = array<i64: 1, 128>}, {pipeline_mode = #tpu.pipeline_mode<synchronous>, transform_indices = @transform_4, window_bounds = array<i64: 1, 128>}, {pipeline_mode = #tpu.pipeline_mode<synchronous>, transform_indices = @transform_5, window_bounds = array<i64: 16, 128>}, {pipeline_mode = #tpu.pipeline_mode<double_buffered>, transform_indices = @transform_6, window_bounds = array<i64: 32, 128>}]} {
    %c0 = arith.constant 0 : index
    %c0_0 = arith.constant 0 : index
    %0 = vector.load %arg1[%c0, %c0_0] : memref<32x48xf32, #tpu.memory_space<vmem>>, vector<32x48xf32>
    %c0_1 = arith.constant 0 : index
    %c0_2 = arith.constant 0 : index
    %1 = vector.load %arg2[%c0_1, %c0_2] : memref<48x128xf32, #tpu.memory_space<vmem>>, vector<48x128xf32>
    %cst = arith.constant dense<0.000000e+00> : vector<32x128xf32>
    %2 = tpu.matmul %0, %1, %cst {dimension_numbers = #tpu.dot_dimension_numbers<[1], [0], [0], [1], [0, 0, 1, 1], [], []>} : vector<32x48xf32>, vector<48x128xf32>, vector<32x128xf32> -> vector<32x128xf32>
    %c0_3 = arith.constant 0 : index
    %c0_4 = arith.constant 0 : index
    %3 = vector.load %arg3[%c0_3, %c0_4] : memref<1x128xf32, #tpu.memory_space<vmem>>, vector<1x128xf32>
    %4 = vector.broadcast %3 : vector<1x128xf32> to vector<32x128xf32>
    %5 = arith.addf %2, %4 : vector<32x128xf32>
    %cst_5 = arith.constant dense<0.000000e+00> : vector<32xf32>
    %6 = vector.multi_reduction <add>, %5, %cst_5 [1] : vector<32x128xf32> to vector<32xf32>
    %7 = vector.shape_cast %6 : vector<32xf32> to vector<32x1xf32>
    %cst_6 = arith.constant 3.125000e-02 : f32
    %8 = vector.broadcast %cst_6 : f32 to vector<32x1xf32>
    %9 = arith.mulf %7, %8 : vector<32x1xf32>
    %10 = arith.mulf %5, %5 : vector<32x128xf32>
    %cst_7 = arith.constant dense<0.000000e+00> : vector<32xf32>
    %11 = vector.multi_reduction <add>, %10, %cst_7 [1] : vector<32x128xf32> to vector<32xf32>
    %12 = vector.shape_cast %11 : vector<32xf32> to vector<32x1xf32>
    %cst_8 = arith.constant 3.125000e-02 : f32
    %13 = vector.broadcast %cst_8 : f32 to vector<32x1xf32>
    %14 = arith.mulf %12, %13 : vector<32x1xf32>
    %15 = arith.mulf %9, %9 : vector<32x1xf32>
    %16 = arith.subf %14, %15 : vector<32x1xf32>
    %cst_9 = arith.constant 0.000000e+00 : f32
    %17 = vector.broadcast %cst_9 : f32 to vector<32x1xf32>
    %18 = arith.maximumf %16, %17 : vector<32x1xf32>
    %19 = vector.broadcast %9 : vector<32x1xf32> to vector<32x128xf32>
    %20 = arith.subf %5, %19 : vector<32x128xf32>
    %cst_10 = arith.constant 9.99999974E-6 : f32
    %21 = vector.broadcast %cst_10 : f32 to vector<32x1xf32>
    %22 = arith.addf %18, %21 : vector<32x1xf32>
    %23 = math.rsqrt %22 : vector<32x1xf32>
    %24 = vector.broadcast %23 : vector<32x1xf32> to vector<32x128xf32>
    %25 = arith.mulf %20, %24 : vector<32x128xf32>
    %c0_11 = arith.constant 0 : index
    %c0_12 = arith.constant 0 : index
    %26 = vector.load %arg4[%c0_11, %c0_12] : memref<1x128xf32, #tpu.memory_space<vmem>>, vector<1x128xf32>
    %27 = vector.broadcast %26 : vector<1x128xf32> to vector<32x128xf32>
    %28 = arith.mulf %25, %27 : vector<32x128xf32>
    %c0_13 = arith.constant 0 : index
    %c0_14 = arith.constant 0 : index
    %29 = vector.load %arg5[%c0_13, %c0_14] : memref<1x128xf32, #tpu.memory_space<vmem>>, vector<1x128xf32>
    %30 = vector.broadcast %29 : vector<1x128xf32> to vector<32x128xf32>
    %31 = arith.addf %28, %30 : vector<32x128xf32>
    %cst_15 = arith.constant 1.000000e-01 : f32
    %32 = vector.broadcast %cst_15 : f32 to vector<32x128xf32>
    %33 = arith.mulf %32, %31 : vector<32x128xf32>
    %34 = arith.maximumf %31, %33 : vector<32x128xf32>
    %35 = vector.shape_cast %34 : vector<32x128xf32> to vector<2x16x128xf32>
    %c0_16 = arith.constant 0 : index
    %c0_17 = arith.constant 0 : index
    %36 = vector.load %arg6[%c0_16, %c0_17] : memref<16x128xf32, #tpu.memory_space<vmem>>, vector<16x128xf32>
    %37 = vector.shape_cast %36 : vector<16x128xf32> to vector<1x16x128xf32>
    %38 = vector.broadcast %37 : vector<1x16x128xf32> to vector<2x16x128xf32>
    %39 = arith.addf %35, %38 : vector<2x16x128xf32>
    %40 = vector.shape_cast %39 : vector<2x16x128xf32> to vector<32x128xf32>
    %c0_18 = arith.constant 0 : index
    %c0_19 = arith.constant 0 : index
    %41 = vector.load %arg7[%c0_18, %c0_19] : memref<32x128xf32, #tpu.memory_space<vmem>>, vector<32x128xf32>
    tpu.vector_store %arg7[%c0_18, %c0_19], %40 {strides = array<i32>} : memref<32x128xf32, #tpu.memory_space<vmem>>, vector<32x128xf32>,
    return
  }
  func.func @transform_0(%arg0: i32) -> (i32, i32) {
    %c0_i32 = arith.constant 0 : i32
    %c0_i32_0 = arith.constant 0 : i32
    return %arg0, %c0_i32 : i32, i32
  }
  func.func @transform_1(%arg0: i32) -> (i32, i32) {
    %c0_i32 = arith.constant 0 : i32
    %c0_i32_0 = arith.constant 0 : i32
    %c0_i32_1 = arith.constant 0 : i32
    return %c0_i32, %c0_i32_0 : i32, i32
  }
  func.func @transform_2(%arg0: i32) -> (i32, i32) {
    %c0_i32 = arith.constant 0 : i32
    %c0_i32_0 = arith.constant 0 : i32
    %c0_i32_1 = arith.constant 0 : i32
    return %c0_i32, %c0_i32_0 : i32, i32
  }
  func.func @transform_3(%arg0: i32) -> (i32, i32) {
    %c0_i32 = arith.constant 0 : i32
    %c0_i32_0 = arith.constant 0 : i32
    %c0_i32_1 = arith.constant 0 : i32
    return %c0_i32, %c0_i32_0 : i32, i32
  }
  func.func @transform_4(%arg0: i32) -> (i32, i32) {
    %c0_i32 = arith.constant 0 : i32
    %c0_i32_0 = arith.constant 0 : i32
    %c0_i32_1 = arith.constant 0 : i32
    return %c0_i32, %c0_i32_0 : i32, i32
  }
  func.func @transform_5(%arg0: i32) -> (i32, i32) {
    %c0_i32 = arith.constant 0 : i32
    %c0_i32_0 = arith.constant 0 : i32
    %c0_i32_1 = arith.constant 0 : i32
    return %c0_i32, %c0_i32_0 : i32, i32
  }
  func.func @transform_6(%arg0: i32) -> (i32, i32) {
    %c0_i32 = arith.constant 0 : i32
    %c0_i32_0 = arith.constant 0 : i32
    return %arg0, %c0_i32 : i32, i32
  }
}

</mosaic_0001>

<bundles_post_ra>
// kernel: tpu_custom_call.1
= control target key start
LH: loop header
LB: loop body
LE: loop exit
PB: predicated region body
PF: predicated region fallthrough
CT: control target
= control target key end

     0   :  { %11 = vsyncpa [#allocation3], 0  ;;  %s522_s0 = inlined_call_operand.hbm [shape: f32[32,48], index: 0, kind: input, shape index: {}]   ;;  %s523_s1 = inlined_call_operand.hbm [shape: f32[48,128], index: 1, kind: input, shape index: {}]   ;;  %s524_s2 = inlined_call_operand.vmem [shape: f32[1,128], index: 2, kind: input, shape index: {}]   ;;  %s525_s3 = inlined_call_operand.vmem [shape: f32[1,128], index: 3, kind: input, shape index: {}]   ;;  %s526_s4 = inlined_call_operand.vmem [shape: f32[1,128], index: 4, kind: input, shape index: {}]   ;;  %s527_s5 = inlined_call_operand.hbm [shape: f32[16,128], index: 5, kind: input, shape index: {}]   ;;  %s528_s6 = inlined_call_operand.hbm [shape: f32[32,128], index: 6, kind: output, shape index: {}]  }
   0x1   :  { %12 = vsyncpa [#allocation6], 0 }
   0x2   :  { %13 = vsyncpa [#allocation4], 0  ;;  %s31_s23 = sshll.u32 %s523_s1, 4  ;;  %s414_s24 = smov [#allocation5]   ;;  %s32_s23 = int_to_ptr.hbm [resolvable:$true] %s31_s23 }
   0x3   :  { %s33_s25 = sshll.u32 %s414_s24, 4  ;;  %s18_s28 = sshll.u32 %s522_s0, 4  ;;  %s34_s25 = int_to_ptr.vmem [resolvable:$true] %s33_s25  ;;  %s19_s28 = int_to_ptr.hbm [resolvable:$true] %s18_s28 }
   0x4   :  { %s415_s29 = smov 128   ;;  %s416_s30 = smov 8  }
   0x5   :  { %39 = dma.hbm_to_vmem [thread:$0]  %s32_s23, 768, %s34_s25, [#allocation6], %s415_s29, %s415_s29, %s416_s30  }
   0x6   :  { %s417_s7 = smov [#allocation2]   ;;  %s50_s1 = sshll.u32 %s527_s5, 4  ;;  %s51_s1 = int_to_ptr.hbm [resolvable:$true] %s50_s1 }
   0x7   :  { %s20_s8 = sshll.u32 %s417_s7, 4  ;;  %s418_s0 = smov [#allocation7]   ;;  %s21_s8 = int_to_ptr.vmem [resolvable:$true] %s20_s8 }
   0x8   :  { %26 = dma.hbm_to_vmem [thread:$0]  %s19_s28, 512, %s21_s8, [#allocation3], %s415_s29, %s415_s29, %s416_s30  }
   0x9   :  { %s52_s11 = sshll.u32 %s418_s0, 4  ;;  %s53_s11 = int_to_ptr.vmem [resolvable:$true] %s52_s11 }
   0xa   :  { %58 = dma.hbm_to_vmem [thread:$0]  %s51_s1, 256, %s53_s11, [#allocation6], %s415_s29, %s415_s29, %s416_s30  }
   0xb   :  { %408 = dma.done.wait [#allocation3], 512  }
   0xc   :  { %409 = vsyncadd [#allocation3], 4294966784 }
   0xd   :  { %410 = dma.done.wait [#allocation6], 1024  }
   0xe   :  { %411 = vsyncadd [#allocation6], 4294966272  ;;  %v80_v0 = vld [vmem:[#allocation5 + $0x28] sm:$0xff]  ;;  %v79_v1 = vld [vmem:[#allocation5 + $0x20] sm:$0xff]  ;;  %vm85_vm0 = vcmask 392192   ;;  %s259_s18 = sshll.u32 %s528_s6, 4  ;;  %s260_s18 = int_to_ptr.hbm [resolvable:$true] %s259_s18 }
   0xf   :  { %108 = vmatpush.msra.mxu0 %v80_v0  ;;  %278 = vmatpush.msra.mxu2 %v80_v0  ;;  %v78_v2 = vld [vmem:[#allocation5 + $0x18] sm:$0xff]  ;;  %v77_v3 = vld [vmem:[#allocation5 + $0x10] sm:$0xff]  ;;  %v76_v4 = vld [vmem:[#allocation5 + $0x8] sm:$0xff] }
  0x10   :  { %277 = vmatpush.msra.mxu1 %v80_v0  ;;  %279 = vmatpush.msra.mxu3 %v80_v0  ;;  %v75_v5 = vld [vmem:[#allocation5] sm:$0xff]  ;;  %v73_v7 = vld [vmem:[#allocation2 + $0x10] sm:$0xff]  ;;  %v72_v8 = vld [vmem:[#allocation2 + $0x8] sm:$0xff] }
  0x11   :  { %109 = vmatpush.msra.mxu0 %v79_v1  ;;  %281 = vmatpush.msra.mxu2 %v79_v1  ;;  %v71_v6 = vld [vmem:[#allocation2] sm:$0xff]  ;;  %v74_v9 = vld [vmem:[#allocation2 + $0x18] sm:$0xff] }
  0x12   :  { %280 = vmatpush.msra.mxu1 %v79_v1  ;;  %282 = vmatpush.msra.mxu3 %v79_v1  ;;  %v301_v10 = vld [vmem:[%s524_s2] ss:$0 sm:$0xff] }
  0x13   :  { %110 = vmatpush.msra.mxu0 %v78_v2  ;;  %284 = vmatpush.msra.mxu2 %v78_v2  ;;  %v302_v61 = vld [vmem:[%s525_s3] ss:$0 sm:$0xff]  ;;  %s419_s3 = smov [#allocation8]  }
  0x14   :  { %283 = vmatpush.msra.mxu1 %v78_v2  ;;  %285 = vmatpush.msra.mxu3 %v78_v2  ;;  %v303_v1 = vld [vmem:[%s526_s4] ss:$0 sm:$0xff]  ;;  %s257_s4 = sshll.u32 %s419_s3, 4  ;;  %s258_s4 = int_to_ptr.vmem [resolvable:$true] %s257_s4 }
  0x15   :  { %111 = vmatpush.msra.mxu0 %v77_v3  ;;  %287 = vmatpush.msra.mxu2 %v77_v3 }
  0x16   :  { %286 = vmatpush.msra.mxu1 %v77_v3  ;;  %288 = vmatpush.msra.mxu3 %v77_v3 }
  0x17   :  { %112 = vmatpush.msra.mxu0 %v76_v4  ;;  %290 = vmatpush.msra.mxu2 %v76_v4 }
  0x18   :  { %289 = vmatpush.msra.mxu1 %v76_v4  ;;  %291 = vmatpush.msra.mxu3 %v76_v4 }
  0x19   :  { %113 = vmatpush.msra.mxu0 %v75_v5  ;;  %293 = vmatpush.msra.mxu2 %v75_v5 }
  0x1a   :  { %273 = vmatmul.msk.f32.vlgmr.msra.gmra.mxu0 %vm85_vm0, %v71_v6  ;;  %275 = vmatmul.msk.f32.vlgmr.msra.gmra.mxu2 %vm85_vm0, %v73_v7 }
  0x1b   :  { %292 = vmatpush.msra.mxu1 %v75_v5  ;;  %294 = vmatpush.msra.mxu3 %v75_v5 }
  0x1c   :  { %274 = vmatmul.msk.f32.vlgmr.msra.gmra.mxu1 %vm85_vm0, %v72_v8  ;;  %276 = vmatmul.msk.f32.vlgmr.msra.gmra.mxu3 %vm85_vm0, %v74_v9 }
  0x97   :  { %v115_v11 = vpop.f32.mrf.mxu0 }
  0x98   :  { %v476_v12 = vadd.f32 %v301_v10, %v115_v11 }
  0x99   :  { %v118_v13 = vpop.f32.mrf.mxu1 }
  0x9a   :  { %127 = vadd.xlane.f32.xlu0 %v476_v12  ;;  %v139_v14 = vmul.f32 %v476_v12, %v476_v12  ;;  %v481_v15 = vadd.f32 %v301_v10, %v118_v13 }
  0x9c   :  { %143 = vadd.xlane.f32.xlu2 %v139_v14  ;;  %v140_v18 = vmul.f32 %v481_v15, %v481_v15 }
  0x9d   :  { %v121_v16 = vpop.f32.mrf.mxu2 }
  0x9e   :  { %v483_v17 = vadd.f32 %v301_v10, %v121_v16 }
  0x9f   :  { %v124_v19 = vpop.f32.mrf.mxu3 }
  0xa0   :  { %131 = vadd.xlane.f32.xlu1 %v483_v17  ;;  %v489_v20 = vadd.f32 %v301_v10, %v124_v19  ;;  %v141_v21 = vmul.f32 %v483_v17, %v483_v17 }
  0xa2   :  { %129 = vadd.xlane.f32.xlu0 %v481_v15  ;;  %v142_v22 = vmul.f32 %v489_v20, %v489_v20 }
  0xa4   :  { %145 = vadd.xlane.f32.xlu2 %v140_v18  ;;  %v243_v18 = vld [vmem:[#allocation7] sm:$0xff] }
  0xa8   :  { %133 = vadd.xlane.f32.xlu1 %v489_v20 }
  0xaa   :  { %147 = vadd.xlane.f32.xlu0 %v141_v21 }
  0xb0   :  { %149 = vadd.xlane.f32.xlu1 %v142_v22 }
 0x10d   :  { %v128_v23 = vpop.xlane.xlu0 %127 }
 0x10e   :  { %v135_v24 = vmul.f32 0.03125, %v128_v23 }
 0x10f   :  { %v144_v25 = vpop.xlane.xlu2 %143 }
 0x110   :  { %v155_v26 = vmul.f32 %v135_v24, %v135_v24  ;;  %v151_v27 = vmul.f32 0.03125, %v144_v25  ;;  %v167_v60 = vsub.f32 %v476_v12, %v135_v24 }
 0x112   :  { %v159_v28 = vsub.f32 %v151_v27, %v155_v26 }
 0x113   :  { %v132_v29 = vpop.xlane.xlu1 %131 }
 0x114   :  { %v163_v30 = vmax.f32 %v159_v28, 0.0  ;;  %v496_v37 = vmul.f32 0.03125, %v132_v29 }
 0x115   :  { %v130_v31 = vpop.xlane.xlu0 %129 }
 0x116   :  { %v171_v32 = vadd.f32 1e-05, %v163_v30  ;;  %v136_v33 = vmul.f32 0.03125, %v130_v31  ;;  %v157_v43 = vmul.f32 %v496_v37, %v496_v37  ;;  %v169_v30 = vsub.f32 %v483_v17, %v496_v37 }
 0x117   :  { %v146_v34 = vpop.xlane.xlu2 %145 }
 0x118   :  { %304 = vrsqrt.f32 %v171_v32  ;;  %v156_v35 = vmul.f32 %v136_v33, %v136_v33  ;;  %v152_v36 = vmul.f32 0.03125, %v146_v34  ;;  %vm181_vm1 = vweird.f32 %v171_v32 }
 0x119   :  { %v168_v14 = vsub.f32 %v481_v15, %v136_v33 }
 0x11a   :  { %v160_v38 = vsub.f32 %v152_v36, %v156_v35 }
 0x11b   :  { %v134_v39 = vpop.xlane.xlu1 %133 }
 0x11c   :  { %v164_v40 = vmax.f32 %v160_v38, 0.0  ;;  %v500_v47 = vmul.f32 0.03125, %v134_v39  ;;  %v244_v38 = vld [vmem:[#allocation7 + $0x8] sm:$0xff] }
 0x11d   :  { %v148_v41 = vpop.xlane.xlu0 %147 }
 0x11e   :  { %v305_v42 = vpop.eup %304  ;;  %v153_v44 = vmul.f32 0.03125, %v148_v41  ;;  %v172_v46 = vadd.f32 1e-05, %v164_v40  ;;  %v158_v53 = vmul.f32 %v500_v47, %v500_v47  ;;  %v170_v41 = vsub.f32 %v489_v20, %v500_v47 }
 0x11f   :  { %v176_v45 = vmul.f32 %v305_v42, %v171_v32  ;;  %vm182_vm2 = vweird.f32 %v305_v42 }
 0x120   :  { %v161_v48 = vsub.f32 %v153_v44, %v157_v43  ;;  %306 = vrsqrt.f32 %v172_v46  ;;  %vm183_vm3 = vmor %vm181_vm1, %vm182_vm2  ;;  %vm191_vm4 = vweird.f32 %v172_v46 }
 0x121   :  { %v177_v49 = vmul.f32 %v305_v42, %v176_v45 }
 0x122   :  { %v165_v50 = vmax.f32 %v161_v48, 0.0 }
 0x123   :  { %v178_v51 = vmul.f32 0.5, %v177_v49  ;;  %v150_v52 = vpop.xlane.xlu1 %149 }
 0x124   :  { %v173_v54 = vadd.f32 1e-05, %v165_v50  ;;  %v154_v55 = vmul.f32 0.03125, %v150_v52 }
 0x125   :  { %v179_v56 = vsub.f32 1.5, %v178_v51 }
 0x126   :  { %308 = vrsqrt.f32 %v173_v54  ;;  %v162_v57 = vsub.f32 %v154_v55, %v158_v53  ;;  %v307_v58 = vpop.eup %306  ;;  %vm201_vm8 = vweird.f32 %v173_v54 }
 0x127   :  { %v180_v59 = vmul.f32 %v305_v42, %v179_v56  ;;  %v186_v62 = vmul.f32 %v307_v58, %v172_v46  ;;  %vm192_vm5 = vweird.f32 %v307_v58 }
 0x128   :  { %v166_v63 = vmax.f32 %v162_v57, 0.0  ;;  %vm193_vm6 = vmor %vm191_vm4, %vm192_vm5 }
 0x129   :  { %v184_v0 = vsel %vm183_vm3, %v305_v42, %v180_v59  ;;  %v187_v3 = vmul.f32 %v307_v58, %v186_v62 }
 0x12a   :  { %v215_v2 = vmul.f32 %v184_v0, %v167_v60  ;;  %v174_v4 = vadd.f32 1e-05, %v166_v63 }
 0x12b   :  { %v188_v7 = vmul.f32 0.5, %v187_v3 }
 0x12c   :  { %v309_v5 = vpop.eup %308  ;;  %v223_v6 = vmul.f32 %v302_v61, %v215_v2  ;;  %310 = vrsqrt.f32 %v174_v4  ;;  %vm211_vm11 = vweird.f32 %v174_v4 }
 0x12d   :  { %v196_v8 = vmul.f32 %v309_v5, %v173_v54  ;;  %v189_v10 = vsub.f32 1.5, %v188_v7  ;;  %vm202_vm7 = vweird.f32 %v309_v5 }
 0x12e   :  { %v231_v9 = vadd.f32 %v303_v1, %v223_v6  ;;  %vm203_vm9 = vmor %vm201_vm8, %vm202_vm7 }
 0x12f   :  { %v197_v11 = vmul.f32 %v309_v5, %v196_v8  ;;  %v190_v12 = vmul.f32 %v307_v58, %v189_v10 }
 0x130   :  { %v235_v13 = vmul.f32 0.1, %v231_v9 }
 0x131   :  { %v198_v16 = vmul.f32 0.5, %v197_v11  ;;  %v194_v21 = vsel %vm193_vm6, %v307_v58, %v190_v12 }
 0x132   :  { %v311_v19 = vpop.eup %310  ;;  %v239_v22 = vmax.f32 %v231_v9, %v235_v13  ;;  %v216_v23 = vmul.f32 %v194_v21, %v168_v14 }
 0x133   :  { %v199_v24 = vsub.f32 1.5, %v198_v16  ;;  %v206_v25 = vmul.f32 %v311_v19, %v174_v4  ;;  %vm212_vm10 = vweird.f32 %v311_v19 }
 0x134   :  { %v245_v26 = vadd.f32 %v243_v18, %v239_v22  ;;  %v224_v27 = vmul.f32 %v302_v61, %v216_v23  ;;  %vm213_vm12 = vmor %vm211_vm11, %vm212_vm10 }
 0x135   :  { %v200_v28 = vmul.f32 %v309_v5, %v199_v24  ;;  %v207_v29 = vmul.f32 %v311_v19, %v206_v25 }
 0x136   :  { %249 = vst [vmem:[#allocation8] sm:$0xff] %v245_v26  ;;  %v232_v15 = vadd.f32 %v303_v1, %v224_v27 }
 0x137   :  { %v204_v31 = vsel %vm203_vm9, %v309_v5, %v200_v28  ;;  %v208_v32 = vmul.f32 0.5, %v207_v29 }
 0x138   :  { %v217_v33 = vmul.f32 %v204_v31, %v169_v30  ;;  %v236_v34 = vmul.f32 0.1, %v232_v15 }
 0x139   :  { %v209_v35 = vsub.f32 1.5, %v208_v32 }
 0x13a   :  { %v225_v36 = vmul.f32 %v302_v61, %v217_v33  ;;  %v240_v40 = vmax.f32 %v232_v15, %v236_v34 }
 0x13b   :  { %v210_v39 = vmul.f32 %v311_v19, %v209_v35 }
 0x13c   :  { %v233_v42 = vadd.f32 %v303_v1, %v225_v36  ;;  %v246_v37 = vadd.f32 %v244_v38, %v240_v40 }
 0x13d   :  { %v214_v17 = vsel %vm213_vm12, %v311_v19, %v210_v39 }
 0x13e   :  { %v237_v43 = vmul.f32 0.1, %v233_v42  ;;  %v218_v44 = vmul.f32 %v214_v17, %v170_v41  ;;  %250 = vst [vmem:[#allocation8 + $0x8] sm:$0xff] %v246_v37 }
 0x140   :  { %v226_v45 = vmul.f32 %v302_v61, %v218_v44  ;;  %v241_v46 = vmax.f32 %v233_v42, %v237_v43 }
 0x142   :  { %v234_v48 = vadd.f32 %v303_v1, %v226_v45  ;;  %v247_v49 = vadd.f32 %v243_v18, %v241_v46 }
 0x144   :  { %v238_v50 = vmul.f32 0.1, %v234_v48  ;;  %251 = vst [vmem:[#allocation8 + $0x10] sm:$0xff] %v247_v49 }
 0x146   :  { %v242_v20 = vmax.f32 %v234_v48, %v238_v50 }
 0x148   :  { %v248_v47 = vadd.f32 %v244_v38, %v242_v20 }
 0x14a   :  { %252 = vst [vmem:[#allocation8 + $0x18] sm:$0xff] %v248_v47 }
 0x14b   :  { %265 = dma.vmem_to_hbm [thread:$0]  %s258_s4, 512, %s260_s18, [#allocation4], %s415_s29, %s415_s29, %s416_s30  }
 0x14c   :  { %412 = dma.done.wait [#allocation4], 512  }
 0x14d   :  { %413 = vsyncadd [#allocation4], 4294966784 }
 0x14e   :  { %270 = vsyncpa [#allocation3], 1 }
 0x14f   :  { %271 = vsyncpa [#allocation6], 1 }
 0x150   :  { %272 = vsyncpa [#allocation4], 1 }

</bundles_post_ra>
